<compile_context>
chip_gen: v5e
topology: v5e:2x2
jax: 0.10.0
libtpu: 0.0.40
codegen_flags: <defaults>
</compile_context>

<pallas_src>
from functools import partial

import jax
import jax.numpy as jnp
from jax.experimental import pallas as pl
from jax.experimental.pallas import tpu as pltpu


# ----------------------------- Pallas kernel -------------------------------

def _ca_kernel(x_ref, w1_ref, b1_ref, w2_ref, b2_ref, o_ref, *, inv_hw, nb):
    """Batch tile of NB images: out = x * sigmoid(W2 @ relu(W1 @ mean_hw(x) + b1) + b2)."""
    w1 = w1_ref[...]                                         # (Cmid, C)  resident
    b1 = b1_ref[...]                                         # (Cmid, 1)
    w2 = w2_ref[...]                                         # (C, Cmid)
    b2 = b2_ref[...]                                         # (C, 1)
    # Static unroll over the (small) batch tile; each iteration is the proven
    # per-image path: lane reduction -> tiny MXU MLP -> lane-broadcast rescale.
    for n in range(nb):
        xn = x_ref[n]                                        # (C, HW)
        # Global average pool over the spatial (lane) axis -> (C, 1), f32.
        pooled = jnp.sum(xn.astype(jnp.float32), axis=-1, keepdims=True) * inv_hw
        # Squeeze-excite MLP (1x1 convs on the pooled vector), f32 accumulation.
        h = jnp.dot(w1, pooled, preferred_element_type=jnp.float32)  # (Cmid, 1)
        h = jnp.maximum(h + b1, 0.0)                                 # ReLU
        s = jnp.dot(w2, h, preferred_element_type=jnp.float32) + b2  # (C, 1)
        s = 1.0 / (1.0 + jnp.exp(-s))                                # sigmoid (EUP exp)
        # Channel-wise rescale, broadcast along lanes (spatial axis).
        o_ref[n] = (xn * s).astype(o_ref.dtype)


# ------------------------------- glue (JAX) --------------------------------

def ca_layer(x, w1, b1, w2, b2, *, vmem_block_budget=8 << 20, max_batch_tile=8):
    """Forward pass of CALayer.

    x  : (N, C, H, W) float32   (NCHW, like PyTorch)
    w1 : (Cmid, C, 1, 1)  = conv_du[0].weight,  Cmid = C // reduction
    b1 : (Cmid,)          = conv_du[0].bias
    w2 : (C, Cmid, 1, 1)  = conv_du[2].weight
    b2 : (C,)             = conv_du[2].bias
    Returns (N, C, H, W).
    """
    N, C, H, W = x.shape
    Cmid = w1.shape[0]
    HW = H * W

    x3 = x.reshape(N, C, HW)                               # free (contiguous) reshape
    w1m = w1.reshape(Cmid, C).astype(jnp.float32)
    w2m = w2.reshape(C, Cmid).astype(jnp.float32)
    b1c = b1.reshape(Cmid, 1).astype(jnp.float32)
    b2c = b2.reshape(C, 1).astype(jnp.float32)

    # Pick the batch tile NB: largest divisor of N (capped) whose double-buffered
    # in+out tiles stay within a conservative VMEM budget.
    plane_bytes = C * HW * x.dtype.itemsize
    per_image = 4 * plane_bytes                            # (in + out) x double buffer
    nb_cap = int(max(1, min(max_batch_tile, vmem_block_budget // per_image)))
    nb = 1
    for d in range(1, N + 1):
        if N % d == 0 and d <= nb_cap:
            nb = d

    kernel = partial(_ca_kernel, inv_hw=1.0 / float(HW), nb=nb)
    out = pl.pallas_call(
        kernel,
        out_shape=jax.ShapeDtypeStruct((N, C, HW), x.dtype),
        grid_spec=pltpu.PrefetchScalarGridSpec(
            num_scalar_prefetch=0,
            grid=(N // nb,),
            in_specs=[
                pl.BlockSpec((nb, C, HW), lambda i: (i, 0, 0)),   # batch tile of planes
                pl.BlockSpec((Cmid, C), lambda i: (0, 0)),        # W1 (resident)
                pl.BlockSpec((Cmid, 1), lambda i: (0, 0)),        # b1
                pl.BlockSpec((C, Cmid), lambda i: (0, 0)),        # W2 (resident)
                pl.BlockSpec((C, 1), lambda i: (0, 0)),           # b2
            ],
            out_specs=pl.BlockSpec((nb, C, HW), lambda i: (i, 0, 0)),
        ),
        compiler_params=pltpu.CompilerParams(
            dimension_semantics=("parallel",)),   # batch tiles split across TCs (v7x)
    )(x3, w1m, b1c, w2m, b2c)
    # TODO(synk): for very large H*W (single plane of several MiB, esp. on v7x's
    # 64 MiB VMEM) add an H*W grid axis with a two-pass pool/rescale accumulator
    # instead of keeping the whole plane resident.
    return out.reshape(N, C, H, W)


# --------------------------------- main -------------------------------------

if __name__ == "__main__":
    # CALayer(channel=64, reduction=16): 1x1 convs 64 -> 4 -> 64.
    N, C, H, W = 2, 64, 16, 16
    reduction = 16
    Cmid = C // reduction

    key = jax.random.PRNGKey(0)
    kx, k1, k2, k3, k4 = jax.random.split(key, 5)
    x = jax.random.normal(kx, (N, C, H, W), dtype=jnp.float32)

    # Deterministic PyTorch-Conv2d-style init (kaiming-uniform-ish, no checkpoint).
    bound1 = 1.0 / (C ** 0.5)
    w1 = jax.random.uniform(k1, (Cmid, C, 1, 1), jnp.float32, -bound1, bound1)
    b1 = jax.random.uniform(k2, (Cmid,), jnp.float32, -bound1, bound1)
    bound2 = 1.0 / (Cmid ** 0.5)
    w2 = jax.random.uniform(k3, (C, Cmid, 1, 1), jnp.float32, -bound2, bound2)
    b2 = jax.random.uniform(k4, (C,), jnp.float32, -bound2, bound2)

    out = jax.block_until_ready(ca_layer(x, w1, b1, w2, b2))

    # Pure-JAX reference (avg-pool -> 1x1 conv MLP -> sigmoid -> rescale).
    pooled = jnp.mean(x, axis=(2, 3))                               # (N, C)
    h = jnp.maximum(pooled @ w1.reshape(Cmid, C).T + b1, 0.0)       # (N, Cmid)
    s = jax.nn.sigmoid(h @ w2.reshape(C, Cmid).T + b2)              # (N, C)
    ref = x * s[:, :, None, None]

    assert out.shape == ref.shape == (N, C, H, W)
    err = float(jnp.max(jnp.abs(out - ref)))
    assert err < 1e-4, f"max abs err {err}"
    print("KERNEL_OK")
</pallas_src>

<mosaic_0001>
module attributes {stable_mosaic.version = 11 : i64} {
  func.func @_ca_kernel(%arg0: i32, %arg1: memref<2x64x256xf32, #tpu.memory_space<vmem>>, %arg2: memref<4x64xf32, #tpu.memory_space<vmem>>, %arg3: memref<4x1xf32, #tpu.memory_space<vmem>>, %arg4: memref<64x4xf32, #tpu.memory_space<vmem>>, %arg5: memref<64x1xf32, #tpu.memory_space<vmem>>, %arg6: memref<2x64x256xf32, #tpu.memory_space<vmem>>) attributes {dimension_semantics = [#tpu.dimension_semantics<parallel>], iteration_bounds = array<i64: 1>, scalar_prefetch = 0 : i64, scratch_operands = 0 : i64, tpu.core_type = #tpu.core_type<tc>, window_params = [{transform_indices = @transform_0, window_bounds = array<i64: 2, 64, 256>}, {pipeline_mode = #tpu.pipeline_mode<synchronous>, transform_indices = @transform_1, window_bounds = array<i64: 4, 64>}, {pipeline_mode = #tpu.pipeline_mode<synchronous>, transform_indices = @transform_2, window_bounds = array<i64: 4, 1>}, {pipeline_mode = #tpu.pipeline_mode<synchronous>, transform_indices = @transform_3, window_bounds = array<i64: 64, 4>}, {pipeline_mode = #tpu.pipeline_mode<synchronous>, transform_indices = @transform_4, window_bounds = array<i64: 64, 1>}, {transform_indices = @transform_5, window_bounds = array<i64: 2, 64, 256>}]} {
    %c0 = arith.constant 0 : index
    %c0_0 = arith.constant 0 : index
    %0 = vector.load %arg2[%c0, %c0_0] : memref<4x64xf32, #tpu.memory_space<vmem>>, vector<4x64xf32>
    %c0_1 = arith.constant 0 : index
    %c0_2 = arith.constant 0 : index
    %1 = vector.load %arg3[%c0_1, %c0_2] : memref<4x1xf32, #tpu.memory_space<vmem>>, vector<4x1xf32>
    %c0_3 = arith.constant 0 : index
    %c0_4 = arith.constant 0 : index
    %2 = vector.load %arg4[%c0_3, %c0_4] : memref<64x4xf32, #tpu.memory_space<vmem>>, vector<64x4xf32>
    %c0_5 = arith.constant 0 : index
    %c0_6 = arith.constant 0 : index
    %3 = vector.load %arg5[%c0_5, %c0_6] : memref<64x1xf32, #tpu.memory_space<vmem>>, vector<64x1xf32>
    %c0_7 = arith.constant 0 : index
    %c0_8 = arith.constant 0 : index
    %c0_9 = arith.constant 0 : index
    %4 = vector.load %arg1[%c0_7, %c0_8, %c0_9] : memref<2x64x256xf32, #tpu.memory_space<vmem>>, vector<1x64x256xf32>
    %5 = vector.shape_cast %4 : vector<1x64x256xf32> to vector<64x256xf32>
    %cst = arith.constant dense<0.000000e+00> : vector<64xf32>
    %6 = vector.multi_reduction <add>, %5, %cst [1] : vector<64x256xf32> to vector<64xf32>
    %7 = vector.shape_cast %6 : vector<64xf32> to vector<64x1xf32>
    %cst_10 = arith.constant 3.906250e-03 : f32
    %8 = vector.broadcast %cst_10 : f32 to vector<64x1xf32>
    %9 = arith.mulf %7, %8 : vector<64x1xf32>
    %cst_11 = arith.constant dense<0.000000e+00> : vector<4x1xf32>
    %10 = tpu.matmul %0, %9, %cst_11 {dimension_numbers = #tpu.dot_dimension_numbers<[1], [0], [0], [1], [0, 0, 1, 1], [], []>} : vector<4x64xf32>, vector<64x1xf32>, vector<4x1xf32> -> vector<4x1xf32>
    %11 = arith.addf %10, %1 : vector<4x1xf32>
    %cst_12 = arith.constant 0.000000e+00 : f32
    %12 = vector.broadcast %cst_12 : f32 to vector<4x1xf32>
    %13 = arith.maximumf %11, %12 : vector<4x1xf32>
    %cst_13 = arith.constant dense<0.000000e+00> : vector<64x1xf32>
    %14 = tpu.matmul %2, %13, %cst_13 {dimension_numbers = #tpu.dot_dimension_numbers<[1], [0], [0], [1], [0, 0, 1, 1], [], []>} : vector<64x4xf32>, vector<4x1xf32>, vector<64x1xf32> -> vector<64x1xf32>
    %15 = arith.addf %14, %3 : vector<64x1xf32>
    %cst_14 = arith.constant 0.000000e+00 : f32
    %16 = vector.broadcast %cst_14 : f32 to vector<64x1xf32>
    %17 = arith.subf %16, %15 : vector<64x1xf32>
    %18 = math.exp %17 : vector<64x1xf32>
    %cst_15 = arith.constant 1.000000e+00 : f32
    %19 = vector.broadcast %cst_15 : f32 to vector<64x1xf32>
    %20 = arith.addf %19, %18 : vector<64x1xf32>
    %cst_16 = arith.constant 1.000000e+00 : f32
    %21 = vector.broadcast %cst_16 : f32 to vector<64x1xf32>
    %22 = arith.divf %21, %20 : vector<64x1xf32>
    %23 = vector.broadcast %22 : vector<64x1xf32> to vector<64x256xf32>
    %24 = arith.mulf %5, %23 : vector<64x256xf32>
    %c0_17 = arith.constant 0 : index
    %c0_18 = arith.constant 0 : index
    %c0_19 = arith.constant 0 : index
    %25 = vector.load %arg6[%c0_17, %c0_18, %c0_19] : memref<2x64x256xf32, #tpu.memory_space<vmem>>, vector<1x64x256xf32>
    %26 = vector.shape_cast %25 : vector<1x64x256xf32> to vector<64x256xf32>
    %27 = vector.shape_cast %24 : vector<64x256xf32> to vector<1x64x256xf32>
    tpu.vector_store %arg6[%c0_17, %c0_18, %c0_19], %27 {strides = array<i32>} : memref<2x64x256xf32, #tpu.memory_space<vmem>>, vector<1x64x256xf32>,
    %c1 = arith.constant 1 : index
    %c0_20 = arith.constant 0 : index
    %c0_21 = arith.constant 0 : index
    %28 = vector.load %arg1[%c1, %c0_20, %c0_21] : memref<2x64x256xf32, #tpu.memory_space<vmem>>, vector<1x64x256xf32>
    %29 = vector.shape_cast %28 : vector<1x64x256xf32> to vector<64x256xf32>
    %cst_22 = arith.constant dense<0.000000e+00> : vector<64xf32>
    %30 = vector.multi_reduction <add>, %29, %cst_22 [1] : vector<64x256xf32> to vector<64xf32>
    %31 = vector.shape_cast %30 : vector<64xf32> to vector<64x1xf32>
    %cst_23 = arith.constant 3.906250e-03 : f32
    %32 = vector.broadcast %cst_23 : f32 to vector<64x1xf32>
    %33 = arith.mulf %31, %32 : vector<64x1xf32>
    %cst_24 = arith.constant dense<0.000000e+00> : vector<4x1xf32>
    %34 = tpu.matmul %0, %33, %cst_24 {dimension_numbers = #tpu.dot_dimension_numbers<[1], [0], [0], [1], [0, 0, 1, 1], [], []>} : vector<4x64xf32>, vector<64x1xf32>, vector<4x1xf32> -> vector<4x1xf32>
    %35 = arith.addf %34, %1 : vector<4x1xf32>
    %cst_25 = arith.constant 0.000000e+00 : f32
    %36 = vector.broadcast %cst_25 : f32 to vector<4x1xf32>
    %37 = arith.maximumf %35, %36 : vector<4x1xf32>
    %cst_26 = arith.constant dense<0.000000e+00> : vector<64x1xf32>
    %38 = tpu.matmul %2, %37, %cst_26 {dimension_numbers = #tpu.dot_dimension_numbers<[1], [0], [0], [1], [0, 0, 1, 1], [], []>} : vector<64x4xf32>, vector<4x1xf32>, vector<64x1xf32> -> vector<64x1xf32>
    %39 = arith.addf %38, %3 : vector<64x1xf32>
    %cst_27 = arith.constant 0.000000e+00 : f32
    %40 = vector.broadcast %cst_27 : f32 to vector<64x1xf32>
    %41 = arith.subf %40, %39 : vector<64x1xf32>
    %42 = math.exp %41 : vector<64x1xf32>
    %cst_28 = arith.constant 1.000000e+00 : f32
    %43 = vector.broadcast %cst_28 : f32 to vector<64x1xf32>
    %44 = arith.addf %43, %42 : vector<64x1xf32>
    %cst_29 = arith.constant 1.000000e+00 : f32
    %45 = vector.broadcast %cst_29 : f32 to vector<64x1xf32>
    %46 = arith.divf %45, %44 : vector<64x1xf32>
    %47 = vector.broadcast %46 : vector<64x1xf32> to vector<64x256xf32>
    %48 = arith.mulf %29, %47 : vector<64x256xf32>
    %c1_30 = arith.constant 1 : index
    %c0_31 = arith.constant 0 : index
    %c0_32 = arith.constant 0 : index
    %49 = vector.load %arg6[%c1_30, %c0_31, %c0_32] : memref<2x64x256xf32, #tpu.memory_space<vmem>>, vector<1x64x256xf32>
    %50 = vector.shape_cast %49 : vector<1x64x256xf32> to vector<64x256xf32>
    %51 = vector.shape_cast %48 : vector<64x256xf32> to vector<1x64x256xf32>
    tpu.vector_store %arg6[%c1_30, %c0_31, %c0_32], %51 {strides = array<i32>} : memref<2x64x256xf32, #tpu.memory_space<vmem>>, vector<1x64x256xf32>,
    return
  }
  func.func @transform_0(%arg0: i32) -> (i32, i32, i32) {
    %c0_i32 = arith.constant 0 : i32
    %c0_i32_0 = arith.constant 0 : i32
    %c0_i32_1 = arith.constant 0 : i32
    return %arg0, %c0_i32, %c0_i32_0 : i32, i32, i32
  }
  func.func @transform_1(%arg0: i32) -> (i32, i32) {
    %c0_i32 = arith.constant 0 : i32
    %c0_i32_0 = arith.constant 0 : i32
    %c0_i32_1 = arith.constant 0 : i32
    return %c0_i32, %c0_i32_0 : i32, i32
  }
  func.func @transform_2(%arg0: i32) -> (i32, i32) {
    %c0_i32 = arith.constant 0 : i32
    %c0_i32_0 = arith.constant 0 : i32
    %c0_i32_1 = arith.constant 0 : i32
    return %c0_i32, %c0_i32_0 : i32, i32
  }
  func.func @transform_3(%arg0: i32) -> (i32, i32) {
    %c0_i32 = arith.constant 0 : i32
    %c0_i32_0 = arith.constant 0 : i32
    %c0_i32_1 = arith.constant 0 : i32
    return %c0_i32, %c0_i32_0 : i32, i32
  }
  func.func @transform_4(%arg0: i32) -> (i32, i32) {
    %c0_i32 = arith.constant 0 : i32
    %c0_i32_0 = arith.constant 0 : i32
    %c0_i32_1 = arith.constant 0 : i32
    return %c0_i32, %c0_i32_0 : i32, i32
  }
  func.func @transform_5(%arg0: i32) -> (i32, i32, i32) {
    %c0_i32 = arith.constant 0 : i32
    %c0_i32_0 = arith.constant 0 : i32
    %c0_i32_1 = arith.constant 0 : i32
    return %arg0, %c0_i32, %c0_i32_0 : i32, i32, i32
  }
}

</mosaic_0001>

<bundles_post_ra>
// kernel: tpu_custom_call.1
= control target key start
LH: loop header
LB: loop body
LE: loop exit
PB: predicated region body
PF: predicated region fallthrough
CT: control target
= control target key end

     0   :  { %10 = vsyncpa [#allocation3], 0  ;;  %s1413_s0 = inlined_call_operand.hbm [shape: f32[2,64,256], index: 0, kind: input, shape index: {}]   ;;  %s1414_s1 = inlined_call_operand.vmem [shape: f32[4,64], index: 1, kind: input, shape index: {}]   ;;  %s1415_s2 = inlined_call_operand.vmem [shape: f32[4,1], index: 2, kind: input, shape index: {}]   ;;  %s1416_s3 = inlined_call_operand.vmem [shape: f32[64,4], index: 3, kind: input, shape index: {}]   ;;  %s1417_s4 = inlined_call_operand.vmem [shape: f32[64,1], index: 4, kind: input, shape index: {}]   ;;  %s1418_s5 = inlined_call_operand.hbm [shape: f32[2,64,256], index: 5, kind: output, shape index: {}]  }
   0x1   :  { %11 = vsyncpa [#allocation4], 0  ;;  %s16_s20 = sshll.u32 %s1413_s0, 4  ;;  %s950_s21 = smov [#allocation2]   ;;  %s17_s20 = int_to_ptr.hbm [resolvable:$true] %s16_s20 }
   0x2   :  { %s18_s22 = sshll.u32 %s950_s21, 4  ;;  %s951_s23 = smov 256   ;;  %s19_s22 = int_to_ptr.vmem [resolvable:$true] %s18_s22 }
   0x3   :  { %s952_s24 = smov 16  }
   0x4   :  { %24 = dma.hbm_to_vmem [thread:$0]  %s17_s20, 4096, %s19_s22, [#allocation3], %s951_s23, %s951_s23, %s952_s24  }
   0x5   :  { %946 = dma.done.wait [#allocation3], 4096  }
   0x6   :  { %947 = vsyncadd [#allocation3], 4294963200  ;;  %v437_v0 = vld [vmem:[#allocation2 + $0xf0] sm:$0xff]  ;;  %v438_v1 = vld [vmem:[#allocation2 + $0xf8] sm:$0xff]  ;;  %vm103_vm0 = vcmask 523264   ;;  %vm153_vm1 = vcmask 1043456  }
   0x7   :  { %v433_v2 = vld [vmem:[#allocation2 + $0xd0] sm:$0xff]  ;;  %v460_v3 = vadd.f32 %v438_v1, %v437_v0  ;;  %v434_v4 = vld [vmem:[#allocation2 + $0xd8] sm:$0xff]  ;;  %v435_v9 = vld [vmem:[#allocation2 + $0xe0] sm:$0xff]  ;;  %vm128_vm2 = vcmask 31744   ;;  %s767_s9 = sshll.u32 %s1418_s5, 4  ;;  %s768_s9 = int_to_ptr.hbm [resolvable:$true] %s767_s9 }
   0x8   :  { %v429_v5 = vld [vmem:[#allocation2 + $0xb0] sm:$0xff]  ;;  %v430_v6 = vld [vmem:[#allocation2 + $0xb8] sm:$0xff]  ;;  %v454_v7 = vadd.f32 %v434_v4, %v433_v2  ;;  %v436_v10 = vld [vmem:[#allocation2 + $0xe8] sm:$0xff] }
   0x9   :  { %v448_v8 = vadd.f32 %v430_v6, %v429_v5  ;;  %461 = vadd.xlane.f32.xlu0 %v460_v3  ;;  %v431_v11 = vld [vmem:[#allocation2 + $0xc0] sm:$0xff]  ;;  %v432_v12 = vld [vmem:[#allocation2 + $0xc8] sm:$0xff]  ;;  %v457_v15 = vadd.f32 %v436_v10, %v435_v9  ;;  %v69_v18 = vld [vmem:[#allocation2 + $0x70] sm:$0xff] }
   0xa   :  { %455 = vadd.xlane.f32.xlu1 %v454_v7  ;;  %v427_v13 = vld [vmem:[#allocation2 + $0xa0] sm:$0xff]  ;;  %v428_v14 = vld [vmem:[#allocation2 + $0xa8] sm:$0xff]  ;;  %v451_v16 = vadd.f32 %v432_v12, %v431_v11  ;;  %v70_v19 = vld [vmem:[#allocation2 + $0x78] sm:$0xff] }
   0xb   :  { %449 = vadd.xlane.f32.xlu2 %v448_v8  ;;  %v445_v17 = vadd.f32 %v428_v14, %v427_v13  ;;  %v425_v20 = vld [vmem:[#allocation2 + $0x90] sm:$0xff]  ;;  %v426_v21 = vld [vmem:[#allocation2 + $0x98] sm:$0xff]  ;;  %v67_v22 = vld [vmem:[#allocation2 + $0x60] sm:$0xff]  ;;  %v92_v24 = vadd.f32 %v70_v19, %v69_v18 }
   0xc   :  { %v68_v23 = vld [vmem:[#allocation2 + $0x68] sm:$0xff]  ;;  %v442_v25 = vadd.f32 %v426_v21, %v425_v20  ;;  %v423_v27 = vld [vmem:[#allocation2 + $0x80] sm:$0xff]  ;;  %v65_v29 = vld [vmem:[#allocation2 + $0x50] sm:$0xff] }
   0xd   :  { %v89_v26 = vadd.f32 %v68_v23, %v67_v22  ;;  %v424_v28 = vld [vmem:[#allocation2 + $0x88] sm:$0xff]  ;;  %v66_v30 = vld [vmem:[#allocation2 + $0x58] sm:$0xff]  ;;  %v63_v31 = vld [vmem:[#allocation2 + $0x40] sm:$0xff] }
   0xe   :  { %v64_v32 = vld [vmem:[#allocation2 + $0x48] sm:$0xff]  ;;  %v439_v33 = vadd.f32 %v424_v28, %v423_v27  ;;  %v86_v34 = vadd.f32 %v66_v30, %v65_v29  ;;  %v991_v36 = vld [vmem:[#allocation2 + $0x30] sm:$0xff]  ;;  %v993_v37 = vld [vmem:[#allocation2 + $0x38] sm:$0xff] }
   0xf   :  { %v83_v35 = vadd.f32 %v64_v32, %v63_v31  ;;  %v995_v38 = vld [vmem:[#allocation2 + $0x20] sm:$0xff]  ;;  %v997_v39 = vld [vmem:[#allocation2 + $0x28] sm:$0xff]  ;;  %v999_v40 = vld [vmem:[#allocation2 + $0x10] sm:$0xff]  ;;  %v80_v42 = vadd.f32 %v993_v37, %v991_v36 }
  0x10   :  { %v1001_v41 = vld [vmem:[#allocation2 + $0x18] sm:$0xff]  ;;  %v77_v43 = vadd.f32 %v997_v39, %v995_v38  ;;  %v1009_v45 = vld [vmem:[#allocation2] sm:$0xff]  ;;  %v1011_v46 = vld [vmem:[#allocation2 + $0x8] sm:$0xff] }
  0x11   :  { %458 = vadd.xlane.f32.xlu0 %v457_v15  ;;  %v74_v44 = vadd.f32 %v1001_v41, %v999_v40  ;;  %v71_v47 = vadd.f32 %v1011_v46, %v1009_v45  ;;  %v37_v5 = vld [vmem:[%s1414_s1] sm:$0xf]  ;;  %v41_v21 = vld [vmem:[%s1416_s3 + $0x10] sm:$0xff]  ;;  %v44_v29 = vld [vmem:[%s1416_s3 + $0x28] sm:$0xff] }
  0x12   :  { %452 = vadd.xlane.f32.xlu1 %v451_v16  ;;  %v39_v22 = vld [vmem:[%s1416_s3] sm:$0xff]  ;;  %v45_v30 = vld [vmem:[%s1416_s3 + $0x30] sm:$0xff]  ;;  %v46_v31 = vld [vmem:[%s1416_s3 + $0x38] sm:$0xff] }
  0x13   :  { %446 = vadd.xlane.f32.xlu2 %v445_v17  ;;  %v38_v17 = vld [vmem:[%s1415_s2] sm:$0xf]  ;;  %v49_v32 = vld [vmem:[%s1417_s4 + $0x10] sm:$0xff] }
  0x14   :  { %v43_v28 = vld [vmem:[%s1416_s3 + $0x20] sm:$0xff] }
  0x19   :  { %93 = vadd.xlane.f32.xlu0 %v92_v24 }
  0x1a   :  { %443 = vadd.xlane.f32.xlu1 %v442_v25  ;;  %v42_v25 = vld [vmem:[%s1416_s3 + $0x18] sm:$0xff] }
  0x1b   :  { %90 = vadd.xlane.f32.xlu2 %v89_v26  ;;  %v40_v26 = vld [vmem:[%s1416_s3 + $0x8] sm:$0xff] }
  0x21   :  { %440 = vadd.xlane.f32.xlu0 %v439_v33  ;;  %v47_v33 = vld [vmem:[%s1417_s4] sm:$0xff] }
  0x22   :  { %87 = vadd.xlane.f32.xlu1 %v86_v34 }
  0x23   :  { %84 = vadd.xlane.f32.xlu2 %v83_v35 }
  0x29   :  { %81 = vadd.xlane.f32.xlu0 %v80_v42 }
  0x2a   :  { %78 = vadd.xlane.f32.xlu1 %v77_v43 }
  0x2b   :  { %75 = vadd.xlane.f32.xlu2 %v74_v44 }
  0x31   :  { %72 = vadd.xlane.f32.xlu0 %v71_v47 }
  0x7c   :  { %v462_v48 = vpop.xlane.xlu0 %461 }
  0x7d   :  { %v470_v49 = vmul.f32 0.00390625, %v462_v48  ;;  %v456_v50 = vpop.xlane.xlu1 %455 }
  0x7e   :  { %v450_v51 = vpop.xlane.xlu2 %449  ;;  %v468_v56 = vmul.f32 0.00390625, %v456_v50 }
  0x7f   :  { %479 = vmatpush.msra.mxu2 %v470_v49  ;;  %v466_v58 = vmul.f32 0.00390625, %v450_v51 }
  0x84   :  { %v459_v52 = vpop.xlane.xlu0 %458 }
  0x85   :  { %v469_v53 = vmul.f32 0.00390625, %v459_v52  ;;  %v453_v54 = vpop.xlane.xlu1 %452 }
  0x86   :  { %v447_v55 = vpop.xlane.xlu2 %446  ;;  %v467_v57 = vmul.f32 0.00390625, %v453_v54  ;;  %v50_v54 = vld [vmem:[%s1417_s4 + $0x18] sm:$0xff] }
  0x87   :  { %480 = vmatpush.msra.mxu2 %v469_v53  ;;  %v465_v60 = vmul.f32 0.00390625, %v447_v55  ;;  %v48_v55 = vld [vmem:[%s1417_s4 + $0x8] sm:$0xff] }
  0x89   :  { %481 = vmatpush.msra.mxu2 %v468_v56 }
  0x8b   :  { %482 = vmatpush.msra.mxu2 %v467_v57 }
  0x8c   :  { %v94_v59 = vpop.xlane.xlu0 %93 }
  0x8d   :  { %483 = vmatpush.msra.mxu2 %v466_v58  ;;  %v102_v61 = vmul.f32 0.00390625, %v94_v59  ;;  %v444_v62 = vpop.xlane.xlu1 %443  ;;  %v953_v58 = vmov 0  }
  0x8e   :  { %v91_v63 = vpop.xlane.xlu2 %90  ;;  %v464_v0 = vmul.f32 0.00390625, %v444_v62  ;;  %808 = vset.pattern.permute.xlu0 %v953_v58  ;;  %807 = vset.pattern.permute.xlu1 %v953_v58 }
  0x8f   :  { %v101_v1 = vmul.f32 0.00390625, %v91_v63  ;;  %115 = vmatpush.msra.mxu0 %v102_v61  ;;  %484 = vmatpush.msra.mxu2 %v465_v60 }
  0x90   :  { %809 = vset.pattern.permute.xlu2 %v953_v58 }
  0x91   :  { %485 = vmatpush.msra.mxu2 %v464_v0  ;;  %116 = vmatpush.msra.mxu0 %v101_v1 }
  0x94   :  { %v441_v2 = vpop.xlane.xlu0 %440 }
  0x95   :  { %v463_v3 = vmul.f32 0.00390625, %v441_v2  ;;  %v88_v4 = vpop.xlane.xlu1 %87 }
  0x96   :  { %v85_v6 = vpop.xlane.xlu2 %84  ;;  %v100_v7 = vmul.f32 0.00390625, %v88_v4 }
  0x97   :  { %v99_v8 = vmul.f32 0.00390625, %v85_v6  ;;  %486 = vmatpush.msra.mxu2 %v463_v3 }
  0x98   :  { %790 = vmatmul.msk.f32.vlgmr.msra.gmra.mxu2 %vm103_vm0, %v37_v5  ;;  %117 = vmatpush.msra.mxu0 %v100_v7 }
  0x9a   :  { %118 = vmatpush.msra.mxu0 %v99_v8 }
  0x9c   :  { %v82_v9 = vpop.xlane.xlu0 %81 }
  0x9d   :  { %v98_v10 = vmul.f32 0.00390625, %v82_v9  ;;  %v79_v11 = vpop.xlane.xlu1 %78 }
  0x9e   :  { %v76_v12 = vpop.xlane.xlu2 %75  ;;  %v97_v13 = vmul.f32 0.00390625, %v79_v11 }
  0x9f   :  { %119 = vmatpush.msra.mxu0 %v98_v10  ;;  %v96_v14 = vmul.f32 0.00390625, %v76_v12  ;;  %v51_v12 = vld [vmem:[%s1417_s4 + $0x20] sm:$0xff] }
  0xa1   :  { %120 = vmatpush.msra.mxu0 %v97_v13 }
  0xa3   :  { %121 = vmatpush.msra.mxu0 %v96_v14 }
  0xa4   :  { %v73_v15 = vpop.xlane.xlu0 %72 }
  0xa5   :  { %v95_v16 = vmul.f32 0.00390625, %v73_v15 }
  0xa7   :  { %122 = vmatpush.msra.mxu0 %v95_v16 }
  0xa8   :  { %780 = vmatmul.msk.f32.vlgmr.msra.gmra.mxu0 %vm103_vm0, %v37_v5 }
 0x11b   :  { %v488_v18 = vpop.f32.mrf.mxu2 }
 0x11c   :  { %v489_v19 = vadd.f32 %v488_v18, %v38_v17 }
 0x11e   :  { %v491_v20 = vmax.f32 %v489_v19, 0.0 }
 0x120   :  { %801 = vmatpush.msk.msra.mxu3 %vm153_vm1, %v491_v20  ;;  %791 = vmatpush.msk.msrb.mxu2 %vm153_vm1, %v491_v20 }
 0x121   :  { %794 = vmatmul.msk.f32.vlgmr.msra.gmra.mxu3 %vm128_vm2, %v41_v21  ;;  %792 = vmatmul.msk.f32.vlgmr.msrb.gmra.mxu2 %vm128_vm2, %v39_v22 }
 0x125   :  { %v124_v23 = vpop.f32.mrf.mxu0 }
 0x126   :  { %v125_v24 = vadd.f32 %v124_v23, %v38_v17 }
 0x128   :  { %v127_v27 = vmax.f32 %v125_v24, 0.0 }
 0x129   :  { %795 = vmatmul.msk.f32.gmra.mxu3 %vm128_vm2, %v42_v25  ;;  %793 = vmatmul.msk.f32.gmra.mxu2 %vm128_vm2, %v40_v26 }
 0x12a   :  { %781 = vmatpush.msk.msrb.mxu0 %vm153_vm1, %v127_v27  ;;  %800 = vmatpush.msk.msra.mxu1 %vm153_vm1, %v127_v27 }
 0x12b   :  { %782 = vmatmul.msk.f32.vlgmr.msrb.gmra.mxu0 %vm128_vm2, %v39_v22  ;;  %784 = vmatmul.msk.f32.vlgmr.msra.gmra.mxu1 %vm128_vm2, %v41_v21 }
 0x131   :  { %796 = vmatmul.msk.f32.gmra.mxu3 %vm128_vm2, %v43_v28 }
 0x133   :  { %783 = vmatmul.msk.f32.gmra.mxu0 %vm128_vm2, %v40_v26  ;;  %785 = vmatmul.msk.f32.gmra.mxu1 %vm128_vm2, %v42_v25 }
 0x139   :  { %797 = vmatmul.msk.f32.gmra.mxu3 %vm128_vm2, %v44_v29 }
 0x13b   :  { %786 = vmatmul.msk.f32.gmra.mxu1 %vm128_vm2, %v43_v28 }
 0x141   :  { %798 = vmatmul.msk.f32.gmra.mxu3 %vm128_vm2, %v45_v30 }
 0x143   :  { %787 = vmatmul.msk.f32.gmra.mxu1 %vm128_vm2, %v44_v29 }
 0x149   :  { %799 = vmatmul.msk.f32.gmra.mxu3 %vm128_vm2, %v46_v31 }
 0x14b   :  { %788 = vmatmul.msk.f32.gmra.mxu1 %vm128_vm2, %v45_v30  ;;  %v52_v30 = vld [vmem:[%s1417_s4 + $0x28] sm:$0xff] }
 0x153   :  { %789 = vmatmul.msk.f32.gmra.mxu1 %vm128_vm2, %v46_v31 }
 0x1a4   :  { %v518_v34 = vpop.f32.mrf.mxu3  ;;  %v512_v35 = vpop.f32.mrf.mxu2 }
 0x1a5   :  { %v519_v42 = vadd.f32 %v518_v34, %v49_v32  ;;  %v513_v43 = vadd.f32 %v512_v35, %v47_v33 }
 0x1a7   :  { %v538_v44 = vsub.f32 0.0, %v519_v42  ;;  %v536_v47 = vsub.f32 0.0, %v513_v43 }
 0x1a8   :  { %v174_v48 = vpop.f32.mrf.mxu0  ;;  %v180_v49 = vpop.f32.mrf.mxu1 }
 0x1a9   :  { %v548_v50 = vmul.f32 1.442695, %v538_v44  ;;  %v175_v51 = vadd.f32 %v174_v48, %v47_v33  ;;  %v181_v52 = vadd.f32 %v180_v49, %v49_v32  ;;  %v544_v53 = vmul.f32 1.442695, %v536_v47 }
 0x1ab   :  { %810 = vpow2.f32 %v548_v50  ;;  %v198_v56 = vsub.f32 0.0, %v175_v51  ;;  %v200_v57 = vsub.f32 0.0, %v181_v52 }
 0x1ac   :  { %812 = vpow2.f32 %v544_v53  ;;  %v521_v59 = vpop.f32.mrf.mxu3  ;;  %v515_v60 = vpop.f32.mrf.mxu2 }
 0x1ad   :  { %v206_v61 = vmul.f32 1.442695, %v198_v56  ;;  %v210_v62 = vmul.f32 1.442695, %v200_v57  ;;  %v522_v63 = vadd.f32 %v521_v59, %v50_v54  ;;  %v516_v0 = vadd.f32 %v515_v60, %v48_v55 }
 0x1af   :  { %814 = vpow2.f32 %v206_v61  ;;  %v539_v1 = vsub.f32 0.0, %v522_v63  ;;  %v537_v2 = vsub.f32 0.0, %v516_v0 }
 0x1b0   :  { %816 = vpow2.f32 %v210_v62  ;;  %v177_v3 = vpop.f32.mrf.mxu0  ;;  %v183_v4 = vpop.f32.mrf.mxu1 }
 0x1b1   :  { %v811_v5 = vpop.eup %810  ;;  %v550_v6 = vmul.f32 1.442695, %v539_v1  ;;  %v178_v7 = vadd.f32 %v177_v3, %v48_v55  ;;  %v184_v8 = vadd.f32 %v183_v4, %v50_v54  ;;  %v546_v11 = vmul.f32 1.442695, %v537_v2 }
 0x1b2   :  { %v813_v9 = vpop.eup %812  ;;  %v1079_v10 = vadd.f32 1.0, %v811_v5 }
 0x1b3   :  { %v1084_v13 = vadd.f32 1.0, %v813_v9  ;;  %818 = vpow2.f32 %v550_v6  ;;  %v199_v14 = vsub.f32 0.0, %v178_v7  ;;  %v201_v15 = vsub.f32 0.0, %v184_v8 }
 0x1b4   :  { %820 = vrcp.f32 %v1079_v10  ;;  %v524_v16 = vpop.f32.mrf.mxu3 }
 0x1b5   :  { %v815_v17 = vpop.eup %814  ;;  %822 = vrcp.f32 %v1084_v13  ;;  %v208_v18 = vmul.f32 1.442695, %v199_v14  ;;  %v525_v19 = vadd.f32 %v524_v16, %v51_v12  ;;  %v212_v22 = vmul.f32 1.442695, %v201_v15 }
 0x1b6   :  { %v817_v20 = vpop.eup %816  ;;  %v1088_v21 = vadd.f32 1.0, %v815_v17  ;;  %824 = vpow2.f32 %v546_v11  ;;  %v579_v35 = vand.u32 2147483648, %v1084_v13  ;;  %v577_v49 = vand.u32 2147483647, %v1084_v13  ;;  %v53_v11 = vld [vmem:[%s1417_s4 + $0x30] sm:$0xff] }
 0x1b7   :  { %v1090_v23 = vadd.f32 1.0, %v817_v20  ;;  %826 = vpow2.f32 %v208_v18  ;;  %v540_v24 = vsub.f32 0.0, %v525_v19  ;;  %vm573_vm9 = vweird.f32 %v1084_v13 }
 0x1b8   :  { %828 = vrcp.f32 %v1088_v21  ;;  %v186_v25 = vpop.f32.mrf.mxu1  ;;  %v241_v32 = vand.u32 2147483648, %v1088_v21  ;;  %v239_v47 = vand.u32 2147483647, %v1088_v21  ;;  %vm235_vm3 = vweird.f32 %v1088_v21 }
 0x1b9   :  { %v819_v26 = vpop.eup %818  ;;  %830 = vrcp.f32 %v1090_v23  ;;  %v552_v27 = vmul.f32 1.442695, %v540_v24  ;;  %v187_v28 = vadd.f32 %v186_v25, %v51_v12  ;;  %v271_v31 = vand.u32 2147483648, %v1090_v23 }
 0x1ba   :  { %v1094_v29 = vpop.eup %820  ;;  %832 = vpow2.f32 %v212_v22  ;;  %v269_v44 = vand.u32 2147483647, %v1090_v23  ;;  %v1111_v51 = vadd.f32 1.0, %v819_v26  ;;  %vm265_vm4 = vweird.f32 %v1090_v23 }
 0x1bb   :  { %v1101_v33 = vpop.eup %822  ;;  %834 = vpow2.f32 %v552_v27  ;;  %v202_v34 = vsub.f32 0.0, %v187_v28  ;;  %v1121_v57 = vor.u32 1.1754944e-38, %v271_v31  ;;  %v1123_v58 = vor.u32 1.1754944e-38, %v241_v32 }
 0x1bc   :  { %v825_v42 = vpop.eup %824  ;;  %v527_v43 = vpop.f32.mrf.mxu3  ;;  %v1108_v48 = vmul.f32 %v1101_v33, %v1084_v13  ;;  %v1129_v63 = vor.u32 1.1754944e-38, %v579_v35  ;;  %vm1133_vm6 = vcmp.eq.f32.partialorder %v269_v44, 8.507059e+37  ;;  %vm1138_vm8 = vcmp.eq.f32.partialorder %v239_v47, 8.507059e+37 }
 0x1bd   :  { %v827_v50 = vpop.eup %826  ;;  %v1113_v52 = vadd.f32 1.0, %v825_v42  ;;  %v214_v53 = vmul.f32 1.442695, %v202_v34  ;;  %v528_v54 = vadd.f32 %v527_v43, %v52_v30  ;;  %vm574_vm10 = vweird.f32 %v1101_v33 }
 0x1be   :  { %v1116_v55 = vpop.eup %828  ;;  %v1118_v56 = vadd.f32 1.0, %v827_v50  ;;  %v570_v59 = vsub.f32 1.0, %v1108_v48  ;;  %vm1181_vm1 = vcmp.eq.f32.partialorder %v577_v49, 8.507059e+37 }
 0x1bf   :  { %v831_v60 = vpop.eup %830  ;;  %836 = vrcp.f32 %v1113_v52  ;;  %v541_v61 = vsub.f32 0.0, %v528_v54  ;;  %v231_v62 = vmul.f32 %v1116_v55, %v1088_v21  ;;  %vm236_vm7 = vweird.f32 %v1116_v55 }
 0x1c0   :  { %v833_v0 = vpop.eup %832  ;;  %838 = vrcp.f32 %v1118_v56  ;;  %v189_v1 = vpop.f32.mrf.mxu1  ;;  %v261_v2 = vmul.f32 %v831_v60, %v1090_v23  ;;  %vm266_vm5 = vweird.f32 %v831_v60  ;;  %v592_v15 = vand.u32 2147483647, %v1113_v52  ;;  %vm1169_vm14 = vmor %vm235_vm3, %vm236_vm7 }
 0x1c1   :  { %v835_v5 = vpop.eup %834  ;;  %v1142_v6 = vadd.f32 1.0, %v833_v0  ;;  %840 = vpow2.f32 %v214_v53  ;;  %v554_v7 = vmul.f32 1.442695, %v541_v61  ;;  %v190_v8 = vadd.f32 %v189_v1, %v52_v30  ;;  %vm267_vm15 = vmor %vm265_vm4, %vm266_vm5 }
 0x1c2   :  { %v1146_v9 = vadd.f32 1.0, %v835_v5  ;;  %v262_v12 = vsub.f32 1.0, %v261_v2  ;;  %v232_v14 = vsub.f32 1.0, %v231_v62  ;;  %vm588_vm11 = vweird.f32 %v1113_v52  ;;  %vm1224_vm4 = vmor %vm573_vm9, %vm574_vm10 }
 0x1c3   :  { %842 = vrcp.f32 %v1142_v6  ;;  %v203_v16 = vsub.f32 0.0, %v190_v8  ;;  %v594_v17 = vand.u32 2147483648, %v1113_v52  ;;  %vm250_vm12 = vweird.f32 %v1118_v56 }
 0x1c4   :  { %844 = vrcp.f32 %v1146_v9  ;;  %v530_v18 = vpop.f32.mrf.mxu3  ;;  %v263_v19 = vmul.f32 %v831_v60, %v262_v12  ;;  %v233_v20 = vmul.f32 %v1116_v55, %v232_v14  ;;  %vm1158_vm13 = vcmp.eq.f32.partialorder %v592_v15, 8.507059e+37 }
 0x1c5   :  { %v837_v22 = vpop.eup %836  ;;  %846 = vpow2.f32 %v554_v7  ;;  %v216_v24 = vmul.f32 1.442695, %v203_v16  ;;  %v531_v25 = vadd.f32 %v530_v18, %v53_v11  ;;  %v595_v34 = vor.u32 1.1754944e-38, %v594_v17 }
 0x1c6   :  { %v1162_v27 = vpop.eup %838  ;;  %v264_v28 = vadd.f32 %v831_v60, %v263_v19  ;;  %v234_v30 = vadd.f32 %v1116_v55, %v233_v20  ;;  %v584_v32 = vmul.f32 %v837_v22, %v1113_v52  ;;  %vm589_vm0 = vweird.f32 %v837_v22 }
 0x1c7   :  { %v841_v35 = vpop.eup %840  ;;  %848 = vpow2.f32 %v216_v24  ;;  %v542_v42 = vsub.f32 0.0, %v531_v25  ;;  %v246_v43 = vmul.f32 %v1162_v27, %v1118_v56  ;;  %vm251_vm2 = vweird.f32 %v1162_v27  ;;  %vm1209_vm3 = vmor %vm588_vm11, %vm589_vm0 }
 0x1c8   :  { %v1185_v44 = vadd.f32 1.0, %v841_v35  ;;  %v192_v47 = vpop.f32.mrf.mxu1  ;;  %v268_v50 = vsel %vm267_vm15, %v831_v60, %v264_v28  ;;  %v238_v53 = vsel %vm1169_vm14, %v1116_v55, %v234_v30  ;;  %v585_v23 = vsub.f32 1.0, %v584_v32  ;;  %v54_v55 = vld [vmem:[%s1417_s4 + $0x38] sm:$0xff]  ;;  %vm1232_vm5 = vmor %vm250_vm12, %vm251_vm2  ;;  %s954_s4 = smov [#allocation5]  }
 0x1c9   :  { %v1190_v54 = vpop.eup %842  ;;  %v556_v61 = vmul.f32 1.442695, %v542_v42  ;;  %v193_v62 = vadd.f32 %v192_v47, %v53_v11  ;;  %v273_v49 = vsel %vm1133_vm6, %v1121_v57, %v268_v50  ;;  %v243_v0 = vsel %vm1138_vm8, %v1123_v58, %v238_v53  ;;  %s765_s6 = sshll.u32 %s954_s4, 4  ;;  %s766_s6 = int_to_ptr.vmem [resolvable:$true] %s765_s6 }
 0x1ca   :  { %v1198_v1 = vpop.eup %844  ;;  %362 = vperm.xlu0 %808, %v273_v49   ;;  %352 = vperm.xlu1 %807, %v243_v0   ;;  %v586_v60 = vmul.f32 %v837_v22, %v585_v23  ;;  %v247_v2 = vsub.f32 1.0, %v246_v43  ;;  %v254_v5 = vand.u32 2147483647, %v1118_v56  ;;  %850 = vrcp.f32 %v1185_v44 }
 0x1cb   :  { %v847_v3 = vpop.eup %846  ;;  %v204_v57 = vsub.f32 0.0, %v193_v62  ;;  %v256_v4 = vand.u32 2147483648, %v1118_v56  ;;  %v571_v7 = vmul.f32 %v1101_v33, %v570_v59  ;;  %852 = vpow2.f32 %v556_v61 }
 0x1cc   :  { %v1217_v8 = vadd.f32 1.0, %v847_v3  ;;  %v533_v11 = vpop.f32.mrf.mxu3  ;;  %v587_v12 = vadd.f32 %v837_v22, %v586_v60  ;;  %v248_v14 = vmul.f32 %v1162_v27, %v247_v2  ;;  %vm255_vm6 = vcmp.eq.f32.partialorder %v254_v5, 8.507059e+37 }
 0x1cd   :  { %v849_v15 = vpop.eup %848  ;;  %v218_v16 = vmul.f32 1.442695, %v204_v57  ;;  %v534_v48 = vadd.f32 %v533_v11, %v54_v55  ;;  %v257_v17 = vor.u32 1.1754944e-38, %v256_v4  ;;  %v572_v18 = vadd.f32 %v1101_v33, %v571_v7 }
 0x1ce   :  { %v1237_v19 = vadd.f32 1.0, %v849_v15  ;;  %v591_v13 = vsel %vm1209_vm3, %v837_v22, %v587_v12  ;;  %v249_v20 = vadd.f32 %v1162_v27, %v248_v14  ;;  %v629_v22 = vmul.f32 %v1198_v1, %v1146_v9 }
 0x1cf   :  { %854 = vpow2.f32 %v218_v16  ;;  %v543_v24 = vsub.f32 0.0, %v534_v48  ;;  %v596_v56 = vsel %vm1158_vm13, %v595_v34, %v591_v13  ;;  %v576_v25 = vsel %vm1224_vm4, %v1101_v33, %v572_v18 }
 0x1d0   :  { %856 = vrcp.f32 %v1111_v51  ;;  %v195_v28 = vpop.f32.mrf.mxu1  ;;  %v253_v30 = vsel %vm1232_vm5, %v1162_v27, %v249_v20  ;;  %v1253_v31 = vpop.eup %850  ;;  %v581_v33 = vsel %vm1181_vm1, %v1129_v63, %v576_v25  ;;  %v630_v27 = vsub.f32 1.0, %v629_v22 }
 0x1d1   :  { %858 = vrcp.f32 %v1217_v8  ;;  %v558_v26 = vmul.f32 1.442695, %v543_v24  ;;  %v196_v32 = vadd.f32 %v195_v28, %v54_v55  ;;  %v258_v34 = vsel %vm255_vm6, %v257_v17, %v253_v30  ;;  %v853_v35 = vpop.eup %852 }
 0x1d2   :  { %860 = vrcp.f32 %v1237_v19  ;;  %695 = vperm.xlu0 %808, %v596_v56   ;;  %357 = vperm.xlu2 %809, %v258_v34   ;;  %v639_v43 = vand.u32 2147483648, %v1146_v9  ;;  %v276_v47 = vmul.f32 %v1190_v54, %v1142_v6  ;;  %v631_v50 = vmul.f32 %v1198_v1, %v630_v27 }
 0x1d3   :  { %862 = vpow2.f32 %v558_v26  ;;  %v205_v42 = vsub.f32 0.0, %v196_v32  ;;  %690 = vperm.xlu1 %807, %v581_v33   ;;  %vm633_vm7 = vweird.f32 %v1146_v9  ;;  %vm634_vm8 = vweird.f32 %v1198_v1 }
 0x1d4   :  { %v637_v53 = vand.u32 2147483647, %v1146_v9  ;;  %v1267_v21 = vadd.f32 1.0, %v853_v35  ;;  %v640_v61 = vor.u32 1.1754944e-38, %v639_v43  ;;  %v277_v62 = vsub.f32 1.0, %v276_v47  ;;  %vm635_vm9 = vmor %vm633_vm7, %vm634_vm8 }
 0x1d5   :  { %v855_v23 = vpop.eup %854  ;;  %v220_v63 = vmul.f32 1.442695, %v205_v42  ;;  %v632_v55 = vadd.f32 %v1198_v1, %v631_v50  ;;  %v284_v60 = vand.u32 2147483647, %v1142_v6  ;;  %v286_v2 = vand.u32 2147483648, %v1142_v6 }
 0x1d6   :  { %v1269_v49 = vpop.eup %856  ;;  %v1271_v0 = vadd.f32 1.0, %v855_v23  ;;  %v278_v3 = vmul.f32 %v1190_v54, %v277_v62  ;;  %vm281_vm10 = vweird.f32 %v1190_v54  ;;  %v291_v57 = vmul.f32 %v1253_v31, %v1185_v44 }
 0x1d7   :  { %v1276_v5 = vpop.eup %858  ;;  %864 = vpow2.f32 %v220_v63  ;;  %v636_v4 = vsel %vm635_vm9, %v1198_v1, %v632_v55  ;;  %vm638_vm11 = vcmp.eq.f32.partialorder %v637_v53, 8.507059e+37  ;;  %vm280_vm12 = vweird.f32 %v1142_v6 }
 0x1d8   :  { %v1284_v58 = vpop.eup %860  ;;  %866 = vrcp.f32 %v1271_v0  ;;  %v641_v11 = vsel %vm638_vm11, %v640_v61, %v636_v4  ;;  %v279_v9 = vadd.f32 %v1190_v54, %v278_v3  ;;  %vm285_vm13 = vcmp.eq.f32.partialorder %v284_v60, 8.507059e+37  ;;  %vm282_vm14 = vmor %vm280_vm12, %vm281_vm10 }
 0x1d9   :  { %v863_v7 = vpop.eup %862  ;;  %v292_v12 = vsub.f32 1.0, %v291_v57  ;;  %v287_v52 = vor.u32 1.1754944e-38, %v286_v2  ;;  %v301_v15 = vand.u32 2147483648, %v1185_v44  ;;  %v599_v16 = vmul.f32 %v1094_v29, %v1079_v10 }
 0x1da   :  { %v1290_v14 = vadd.f32 1.0, %v863_v7  ;;  %710 = vperm.xlu0 %808, %v641_v11   ;;  %v283_v1 = vsel %vm282_vm14, %v1190_v54, %v279_v9  ;;  %vm296_vm15 = vweird.f32 %v1253_v31  ;;  %v299_v48 = vand.u32 2147483647, %v1185_v44 }
 0x1db   :  { %v293_v6 = vmul.f32 %v1253_v31, %v292_v12  ;;  %868 = vrcp.f32 %v1267_v21  ;;  %v288_v59 = vsel %vm285_vm13, %v287_v52, %v283_v1  ;;  %vm295_vm0 = vweird.f32 %v1185_v44 }
 0x1dc   :  { %vm603_vm1 = vweird.f32 %v1079_v10  ;;  %870 = vrcp.f32 %v1290_v14  ;;  %367 = vperm.xlu2 %809, %v288_v59   ;;  %v600_v54 = vsub.f32 1.0, %v599_v16  ;;  %vm604_vm2 = vweird.f32 %v1094_v29  ;;  %vm297_vm3 = vmor %vm295_vm0, %vm296_vm15 }
 0x1dd   :  { %v865_v17 = vpop.eup %864  ;;  %v294_v18 = vadd.f32 %v1253_v31, %v293_v6  ;;  %v302_v24 = vor.u32 1.1754944e-38, %v301_v15  ;;  %v609_v56 = vand.u32 2147483648, %v1079_v10  ;;  %v614_v44 = vmul.f32 %v1269_v49, %v1111_v51  ;;  %vm605_vm6 = vmor %vm603_vm1, %vm604_vm2 }
 0x1de   :  { %v1305_v13 = vpop.eup %866  ;;  %v1307_v20 = vadd.f32 1.0, %v865_v17  ;;  %vm300_vm4 = vcmp.eq.f32.partialorder %v299_v48, 8.507059e+37  ;;  %v601_v28 = vmul.f32 %v1094_v29, %v600_v54  ;;  %v607_v30 = vand.u32 2147483647, %v1079_v10 }
 0x1df   :  { %v298_v25 = vsel %vm297_vm3, %v1253_v31, %v294_v18  ;;  %v615_v26 = vsub.f32 1.0, %v614_v44  ;;  %vm618_vm5 = vweird.f32 %v1111_v51  ;;  %v622_v34 = vand.u32 2147483647, %v1111_v51 }
 0x1e0   :  { %872 = vrcp.f32 %v1307_v20  ;;  %v303_v22 = vsel %vm300_vm4, %v302_v24, %v298_v25  ;;  %v602_v32 = vadd.f32 %v1094_v29, %v601_v28  ;;  %v624_v35 = vand.u32 2147483648, %v1111_v51 }
 0x1e1   :  { %372 = vperm.xlu1 %807, %v303_v22   ;;  %v306_v31 = vmul.f32 %v1284_v58, %v1237_v19  ;;  %v1322_v33 = vpop.eup %868  ;;  %v610_v27 = vor.u32 1.1754944e-38, %v609_v56  ;;  %v616_v42 = vmul.f32 %v1269_v49, %v615_v26  ;;  %vm619_vm7 = vweird.f32 %v1269_v49 }
 0x1e2   :  { %v314_v43 = vand.u32 2147483647, %v1237_v19  ;;  %v1331_v47 = vpop.eup %870  ;;  %v606_v50 = vsel %vm605_vm6, %v1094_v29, %v602_v32  ;;  %vm608_vm8 = vcmp.eq.f32.partialorder %v607_v30, 8.507059e+37  ;;  %v316_v23 = vand.u32 2147483648, %v1237_v19  ;;  %vm620_vm10 = vmor %vm618_vm5, %vm619_vm7 }
 0x1e3   :  { %v307_v53 = vsub.f32 1.0, %v306_v31  ;;  %v611_v63 = vsel %vm608_vm8, %v610_v27, %v606_v50  ;;  %v617_v61 = vadd.f32 %v1269_v49, %v616_v42  ;;  %vm310_vm9 = vweird.f32 %v1237_v19 }
 0x1e4   :  { %v321_v10 = vmul.f32 %v1305_v13, %v1271_v0  ;;  %700 = vperm.xlu2 %809, %v611_v63   ;;  %vm623_vm11 = vcmp.eq.f32.partialorder %v622_v34, 8.507059e+37  ;;  %v625_v62 = vor.u32 1.1754944e-38, %v624_v35  ;;  %vm311_vm12 = vweird.f32 %v1284_v58 }
 0x1e5   :  { %v308_v29 = vmul.f32 %v1284_v58, %v307_v53  ;;  %v621_v60 = vsel %vm620_vm10, %v1269_v49, %v617_v61  ;;  %vm1344_vm13 = vcmp.eq.f32.partialorder %v314_v43, 8.507059e+37  ;;  %v331_v57 = vand.u32 2147483648, %v1271_v0  ;;  %vm312_vm15 = vmor %vm310_vm9, %vm311_vm12 }
 0x1e6   :  { %v873_v55 = vpop.eup %872  ;;  %v322_v3 = vsub.f32 1.0, %v321_v10  ;;  %v317_v51 = vor.u32 1.1754944e-38, %v316_v23  ;;  %vm325_vm14 = vweird.f32 %v1271_v0  ;;  %v674_v7 = vmul.f32 %v1331_v47, %v1290_v14 }
 0x1e7   :  { %v309_v4 = vadd.f32 %v1284_v58, %v308_v29  ;;  %v626_v11 = vsel %vm623_vm11, %v625_v62, %v621_v60  ;;  %vm326_vm0 = vweird.f32 %v1305_v13  ;;  %v329_v9 = vand.u32 2147483647, %v1271_v0 }
 0x1e8   :  { %v323_v49 = vmul.f32 %v1305_v13, %v322_v3  ;;  %v332_v52 = vor.u32 1.1754944e-38, %v331_v57  ;;  %v675_v15 = vsub.f32 1.0, %v674_v7  ;;  %vm679_vm1 = vweird.f32 %v1331_v47  ;;  %vm327_vm2 = vmor %vm325_vm14, %vm326_vm0 }
 0x1e9   :  { %705 = vperm.xlu1 %807, %v626_v11   ;;  %v313_v12 = vsel %vm312_vm15, %v1284_v58, %v309_v4  ;;  %v682_v1 = vand.u32 2147483647, %v1290_v14  ;;  %v684_v19 = vand.u32 2147483648, %v1290_v14  ;;  %v336_v6 = vmul.f32 %v873_v55, %v1307_v20  ;;  %v875_v11 = vld [vmem:[#allocation2 + $0xa8] sm:$0xff] }
 0x1ea   :  { %v324_v16 = vadd.f32 %v1305_v13, %v323_v49  ;;  %v318_v48 = vsel %vm1344_vm13, %v317_v51, %v313_v12  ;;  %v676_v58 = vmul.f32 %v1331_v47, %v675_v15  ;;  %vm340_vm3 = vweird.f32 %v1307_v20  ;;  %v877_v12 = vld [vmem:[#allocation2 + $0x98] sm:$0xff] }
 0x1eb   :  { %vm341_vm4 = vweird.f32 %v873_v55  ;;  %v337_v17 = vsub.f32 1.0, %v336_v6  ;;  %v344_v18 = vand.u32 2147483647, %v1307_v20  ;;  %v346_v54 = vand.u32 2147483648, %v1307_v20  ;;  %v880_v6 = vld [vmem:[#allocation2 + $0x58] sm:$0xff] }
 0x1ec   :  { %v328_v59 = vsel %vm327_vm2, %v1305_v13, %v324_v16  ;;  %377 = vperm.xlu2 %809, %v318_v48   ;;  %vm330_vm5 = vcmp.eq.f32.partialorder %v329_v9, 8.507059e+37  ;;  %v677_v24 = vadd.f32 %v1331_v47, %v676_v58  ;;  %vm678_vm6 = vweird.f32 %v1290_v14  ;;  %vm342_vm9 = vmor %vm340_vm3, %vm341_vm4  ;;  %v876_v9 = vld [vmem:[#allocation2 + $0x90] sm:$0xff] }
 0x1ed   :  { %v659_v0 = vmul.f32 %v1322_v33, %v1267_v21  ;;  %v333_v56 = vsel %vm330_vm5, %v332_v52, %v328_v59  ;;  %vm680_vm7 = vmor %vm678_vm6, %vm679_vm1  ;;  %v685_v44 = vor.u32 1.1754944e-38, %v684_v19  ;;  %v338_v13 = vmul.f32 %v873_v55, %v337_v17  ;;  %v882_v17 = vld [vmem:[#allocation2 + $0xc0] sm:$0xff] }
 0x1ee   :  { %v681_v25 = vsel %vm680_vm7, %v1331_v47, %v677_v24  ;;  %vm683_vm8 = vcmp.eq.f32.partialorder %v682_v1, 8.507059e+37  ;;  %v347_v28 = vor.u32 1.1754944e-38, %v346_v54  ;;  %vm345_vm10 = vcmp.eq.f32.partialorder %v344_v18, 8.507059e+37  ;;  %v879_v1 = vld [vmem:[#allocation2 + $0x50] sm:$0xff]  ;;  %v883_v54 = vld [vmem:[#allocation2 + $0xc8] sm:$0xff] }
 0x1ef   :  { %v660_v30 = vsub.f32 1.0, %v659_v0  ;;  %v686_v22 = vsel %vm683_vm8, %v685_v44, %v681_v25  ;;  %v339_v14 = vadd.f32 %v873_v55, %v338_v13  ;;  %v644_v26 = vmul.f32 %v1276_v5, %v1217_v8  ;;  %v885_v13 = vld [vmem:[#allocation2 + $0x78] sm:$0xff] }
 0x1f0   :  { %725 = vperm.xlu0 %808, %v686_v22   ;;  %vm664_vm11 = vweird.f32 %v1322_v33  ;;  %v669_v35 = vand.u32 2147483648, %v1267_v21  ;;  %vm663_vm12 = vweird.f32 %v1267_v21  ;;  %v667_v42 = vand.u32 2147483647, %v1267_v21 }
 0x1f1   :  { %382 = vperm.xlu1 %807, %v333_v56   ;;  %v661_v32 = vmul.f32 %v1322_v33, %v660_v30  ;;  %v343_v34 = vsel %vm342_vm9, %v873_v55, %v339_v14  ;;  %v645_v31 = vsub.f32 1.0, %v644_v26  ;;  %vm665_vm13 = vmor %vm663_vm12, %vm664_vm11  ;;  %vm649_vm14 = vweird.f32 %v1276_v5  ;;  %v884_v56 = vld [vmem:[#allocation2 + $0x70] sm:$0xff]  ;;  %v886_v30 = vld [vmem:[#allocation2 + $0x40] sm:$0xff] }
 0x1f2   :  { %v348_v20 = vsel %vm345_vm10, %v347_v28, %v343_v34  ;;  %v670_v50 = vor.u32 1.1754944e-38, %v669_v35  ;;  %v654_v23 = vand.u32 2147483648, %v1217_v8  ;;  %vm668_vm15 = vcmp.eq.f32.partialorder %v667_v42, 8.507059e+37  ;;  %v887_v14 = vld [vmem:[#allocation2 + $0x48] sm:$0xff]  ;;  %v888_v34 = vld [vmem:[#allocation2 + $0xd0] sm:$0xff] }
 0x1f3   :  { %v662_v27 = vadd.f32 %v1322_v33, %v661_v32  ;;  %v646_v43 = vmul.f32 %v1276_v5, %v645_v31  ;;  %vm648_vm0 = vweird.f32 %v1217_v8  ;;  %v652_v63 = vand.u32 2147483647, %v1217_v8  ;;  %v889_v31 = vld [vmem:[#allocation2 + $0xd8] sm:$0xff]  ;;  %v890_v42 = vld [vmem:[#allocation2 + $0xb0] sm:$0xff] }
 0x1f4   :  { %387 = vperm.xlu2 %809, %v348_v20   ;;  %vm650_vm1 = vmor %vm648_vm0, %vm649_vm14  ;;  %v655_v10 = vor.u32 1.1754944e-38, %v654_v23 }
 0x1f5   :  { %v666_v47 = vsel %vm665_vm13, %v1322_v33, %v662_v27  ;;  %v647_v53 = vadd.f32 %v1276_v5, %v646_v43  ;;  %vm653_vm2 = vcmp.eq.f32.partialorder %v652_v63, 8.507059e+37  ;;  %v892_v63 = vld [vmem:[#allocation2 + $0x60] sm:$0xff] }
 0x1f6   :  { %v671_v61 = vsel %vm668_vm15, %v670_v50, %v666_v47  ;;  %v891_v47 = vld [vmem:[#allocation2 + $0xb8] sm:$0xff] }
 0x1f7   :  { %v651_v21 = vsel %vm650_vm1, %v1276_v5, %v647_v53 }
 0x1f8   :  { %v656_v33 = vsel %vm653_vm2, %v655_v10, %v651_v21  ;;  %v893_v21 = vld [vmem:[#allocation2 + $0x68] sm:$0xff] }
 0x1f9   :  { %720 = vperm.xlu1 %807, %v671_v61  }
 0x1fc   :  { %715 = vperm.xlu2 %809, %v656_v33   ;;  %v894_v33 = vld [vmem:[#allocation2 + $0xf0] sm:$0xff] }
 0x22c   :  { %v358_v62 = vpop.permute.xlu2 %357 }
 0x22d   :  { %v392_v29 = vmul.f32 %v358_v62, %v999_v40  ;;  %v393_v55 = vmul.f32 %v358_v62, %v1001_v41  ;;  %v874_v41 = vld [vmem:[#allocation2 + $0xa0] sm:$0xff] }
 0x22f   :  { %408 = vst [vmem:[#allocation5 + $0x10] sm:$0xff] %v392_v29  ;;  %v895_v29 = vld [vmem:[#allocation2 + $0xf8] sm:$0xff] }
 0x230   :  { %409 = vst [vmem:[#allocation5 + $0x18] sm:$0xff] %v393_v55 }
 0x236   :  { %v368_v60 = vpop.permute.xlu2 %367 }
 0x237   :  { %v396_v2 = vmul.f32 %v368_v60, %v991_v36  ;;  %v397_v8 = vmul.f32 %v368_v60, %v993_v37 }
 0x239   :  { %412 = vst [vmem:[#allocation5 + $0x30] sm:$0xff] %v396_v2  ;;  %v896_v2 = vld [vmem:[#allocation2 + $0xe0] sm:$0xff] }
 0x23a   :  { %413 = vst [vmem:[#allocation5 + $0x38] sm:$0xff] %v397_v8 }
 0x23c   :  { %v363_v3 = vpop.permute.xlu0 %362  ;;  %v353_v5 = vpop.permute.xlu1 %352 }
 0x23d   :  { %v394_v57 = vmul.f32 %v363_v3, %v995_v38  ;;  %v395_v4 = vmul.f32 %v363_v3, %v997_v39  ;;  %v390_v51 = vmul.f32 %v353_v5, %v1009_v45  ;;  %v391_v36 = vmul.f32 %v353_v5, %v1011_v46  ;;  %v878_v45 = vld [vmem:[#allocation2 + $0x80] sm:$0xff]  ;;  %v881_v46 = vld [vmem:[#allocation2 + $0x88] sm:$0xff] }
 0x23e   :  { %v701_v40 = vpop.permute.xlu2 %700  ;;  %v897_v3 = vld [vmem:[#allocation2 + $0xe8] sm:$0xff] }
 0x23f   :  { %410 = vst [vmem:[#allocation5 + $0x20] sm:$0xff] %v394_v57  ;;  %v732_v7 = vmul.f32 %v874_v41, %v701_v40  ;;  %v733_v49 = vmul.f32 %v875_v11, %v701_v40 }
 0x240   :  { %411 = vst [vmem:[#allocation5 + $0x28] sm:$0xff] %v395_v4 }
 0x241   :  { %406 = vst [vmem:[#allocation5] sm:$0xff] %v390_v51 }
 0x242   :  { %749 = vst [vmem:[#allocation5 + $0xa0] sm:$0xff] %v732_v7 }
 0x243   :  { %750 = vst [vmem:[#allocation5 + $0xa8] sm:$0xff] %v733_v49 }
 0x244   :  { %407 = vst [vmem:[#allocation5 + $0x8] sm:$0xff] %v391_v36  ;;  %v696_v37 = vpop.permute.xlu0 %695 }
 0x245   :  { %v730_v38 = vmul.f32 %v876_v9, %v696_v37  ;;  %v731_v39 = vmul.f32 %v877_v12, %v696_v37  ;;  %v691_v52 = vpop.permute.xlu1 %690 }
 0x246   :  { %v728_v15 = vmul.f32 %v878_v45, %v691_v52  ;;  %v378_v16 = vpop.permute.xlu2 %377  ;;  %v729_v58 = vmul.f32 %v881_v46, %v691_v52 }
 0x247   :  { %747 = vst [vmem:[#allocation5 + $0x90] sm:$0xff] %v730_v38  ;;  %v400_v19 = vmul.f32 %v879_v1, %v378_v16  ;;  %v401_v48 = vmul.f32 %v880_v6, %v378_v16 }
 0x248   :  { %748 = vst [vmem:[#allocation5 + $0x98] sm:$0xff] %v731_v39 }
 0x249   :  { %745 = vst [vmem:[#allocation5 + $0x80] sm:$0xff] %v728_v15 }
 0x24a   :  { %416 = vst [vmem:[#allocation5 + $0x50] sm:$0xff] %v400_v19 }
 0x24b   :  { %417 = vst [vmem:[#allocation5 + $0x58] sm:$0xff] %v401_v48 }
 0x24c   :  { %746 = vst [vmem:[#allocation5 + $0x88] sm:$0xff] %v729_v58  ;;  %v711_v59 = vpop.permute.xlu0 %710 }
 0x24d   :  { %v736_v18 = vmul.f32 %v882_v17, %v711_v59  ;;  %v737_v24 = vmul.f32 %v883_v54, %v711_v59 }
 0x24e   :  { %v388_v0 = vpop.permute.xlu2 %387 }
 0x24f   :  { %753 = vst [vmem:[#allocation5 + $0xc0] sm:$0xff] %v736_v18  ;;  %v404_v44 = vmul.f32 %v884_v56, %v388_v0  ;;  %v405_v25 = vmul.f32 %v885_v13, %v388_v0 }
 0x250   :  { %754 = vst [vmem:[#allocation5 + $0xc8] sm:$0xff] %v737_v24 }
 0x251   :  { %420 = vst [vmem:[#allocation5 + $0x70] sm:$0xff] %v404_v44 }
 0x252   :  { %421 = vst [vmem:[#allocation5 + $0x78] sm:$0xff] %v405_v25 }
 0x253   :  { %v373_v28 = vpop.permute.xlu1 %372 }
 0x254   :  { %v398_v22 = vmul.f32 %v886_v30, %v373_v28  ;;  %v399_v26 = vmul.f32 %v887_v14, %v373_v28 }
 0x256   :  { %414 = vst [vmem:[#allocation5 + $0x40] sm:$0xff] %v398_v22  ;;  %v716_v32 = vpop.permute.xlu2 %715 }
 0x257   :  { %415 = vst [vmem:[#allocation5 + $0x48] sm:$0xff] %v399_v26  ;;  %v738_v35 = vmul.f32 %v888_v34, %v716_v32  ;;  %v739_v20 = vmul.f32 %v889_v31, %v716_v32 }
 0x259   :  { %755 = vst [vmem:[#allocation5 + $0xd0] sm:$0xff] %v738_v35 }
 0x25a   :  { %756 = vst [vmem:[#allocation5 + $0xd8] sm:$0xff] %v739_v20 }
 0x25b   :  { %v706_v27 = vpop.permute.xlu1 %705 }
 0x25c   :  { %v734_v43 = vmul.f32 %v890_v42, %v706_v27  ;;  %v735_v50 = vmul.f32 %v891_v47, %v706_v27 }
 0x25e   :  { %751 = vst [vmem:[#allocation5 + $0xb0] sm:$0xff] %v734_v43 }
 0x25f   :  { %752 = vst [vmem:[#allocation5 + $0xb8] sm:$0xff] %v735_v50 }
 0x262   :  { %v726_v23 = vpop.permute.xlu0 %725 }
 0x263   :  { %v383_v53 = vpop.permute.xlu1 %382  ;;  %v742_v62 = vmul.f32 %v894_v33, %v726_v23  ;;  %v743_v55 = vmul.f32 %v895_v29, %v726_v23 }
 0x264   :  { %v402_v61 = vmul.f32 %v892_v63, %v383_v53  ;;  %v403_v10 = vmul.f32 %v893_v21, %v383_v53 }
 0x265   :  { %759 = vst [vmem:[#allocation5 + $0xf0] sm:$0xff] %v742_v62 }
 0x266   :  { %418 = vst [vmem:[#allocation5 + $0x60] sm:$0xff] %v402_v61 }
 0x267   :  { %419 = vst [vmem:[#allocation5 + $0x68] sm:$0xff] %v403_v10 }
 0x268   :  { %760 = vst [vmem:[#allocation5 + $0xf8] sm:$0xff] %v743_v55 }
 0x26b   :  { %v721_v60 = vpop.permute.xlu1 %720 }
 0x26c   :  { %v740_v8 = vmul.f32 %v896_v2, %v721_v60  ;;  %v741_v5 = vmul.f32 %v897_v3, %v721_v60 }
 0x26e   :  { %757 = vst [vmem:[#allocation5 + $0xe0] sm:$0xff] %v740_v8 }
 0x26f   :  { %758 = vst [vmem:[#allocation5 + $0xe8] sm:$0xff] %v741_v5 }
 0x270   :  { %773 = dma.vmem_to_hbm [thread:$0]  %s766_s6, 4096, %s768_s9, [#allocation4], %s951_s23, %s951_s23, %s952_s24  }
 0x271   :  { %948 = dma.done.wait [#allocation4], 4096  }
 0x272   :  { %949 = vsyncadd [#allocation4], 4294963200 }
 0x273   :  { %778 = vsyncpa [#allocation3], 1 }
 0x274   :  { %779 = vsyncpa [#allocation4], 1 }

</bundles_post_ra>
